<compile_context>
chip_gen: v5e
topology: v5e:2x2
jax: 0.10.0
libtpu: 0.0.40
codegen_flags: <defaults>
</compile_context>

<pallas_src>
import math

import jax
import jax.numpy as jnp
from jax.experimental import pallas as pl
from jax.experimental.pallas import tpu as pltpu


# ----------------------------------------------------------------------------
# Kernels
# ----------------------------------------------------------------------------
def _dense_kernel_accum_out(x_ref, w_ref, b_ref, o_ref):
    """f32-output path: accumulate directly into the resident output block."""
    k = pl.program_id(2)

    @pl.when(k == 0)
    def _():
        o_ref[...] = jnp.zeros_like(o_ref)

    o_ref[...] += jnp.dot(
        x_ref[...], w_ref[...], preferred_element_type=jnp.float32
    )

    @pl.when(k == pl.num_programs(2) - 1)
    def _():
        o_ref[...] = o_ref[...] + b_ref[...]


def _dense_kernel_scratch(x_ref, w_ref, b_ref, o_ref, acc_ref):
    """Non-f32-output path: f32 VMEM accumulator, cast once at the store."""
    k = pl.program_id(2)

    @pl.when(k == 0)
    def _():
        acc_ref[...] = jnp.zeros_like(acc_ref)

    acc_ref[...] += jnp.dot(
        x_ref[...], w_ref[...], preferred_element_type=jnp.float32
    )

    @pl.when(k == pl.num_programs(2) - 1)
    def _():
        o_ref[...] = (acc_ref[...] + b_ref[...]).astype(o_ref.dtype)


# ----------------------------------------------------------------------------
# Helpers
# ----------------------------------------------------------------------------
def _round_up(v, m):
    return ((v + m - 1) // m) * m


def _largest_aligned_divisor(n, align, cap):
    """Largest multiple of `align` that divides `n` and is <= min(n, cap)."""
    best = align
    m = align
    limit = min(n, cap)
    while m <= limit:
        if n % m == 0:
            best = m
        m += align
    return best


def _vmem_budgets():
    """(vmem_limit_bytes, tile_working_set_budget) per TPU generation."""
    cap = 64 * 1024 * 1024  # conservative fallback (v7x per-core physical)
    try:
        cap = int(pltpu.get_tpu_info().vmem_capacity_bytes)
    except Exception:
        pass
    vmem_limit = min(int(cap * 0.75), cap - (4 << 20))
    tile_budget = max(vmem_limit - (4 << 20), 8 << 20)
    return vmem_limit, tile_budget


# ----------------------------------------------------------------------------
# One-time parameter preparation (hoisted out of the per-call forward path)
# ----------------------------------------------------------------------------
def prepare_dense_params(w, b, compute_dtype=None):
    """Pre-transpose + lane-pad the Linear weight once.

    w: (output_dim, input_dim)   b: (output_dim,)
    Returns a dict holding the (K_pad, N_pad) weight in the MXU feed dtype and
    the (1, N_pad) f32 bias.  Do this once per parameter update, not per call.
    """
    N, K = w.shape
    cdt = jnp.dtype(compute_dtype) if compute_dtype is not None else jnp.dtype(w.dtype)
    K_pad = _round_up(K, 128)
    N_pad = _round_up(N, 128)
    w_kn = jnp.pad(w.T, ((0, K_pad - K), (0, N_pad - N))).astype(cdt)
    b_p = jnp.pad(b, (0, N_pad - N)).reshape(1, N_pad).astype(jnp.float32)
    return {"w": w_kn, "b": b_p, "in_dim": K, "out_dim": N, "compute_dtype": cdt}


# ----------------------------------------------------------------------------
# Forward
# ----------------------------------------------------------------------------
def dense_forward(x, params, *, use_pallas=None):
    """y = x @ w.T + b, then append trailing singleton dim (PyTorch Dense)."""
    w_p = params["w"]
    b_p = params["b"]
    K = params["in_dim"]
    N = params["out_dim"]
    cdt = params["compute_dtype"]

    lead = x.shape[:-1]
    assert x.shape[-1] == K
    x2 = x.reshape(-1, K)
    B = x2.shape[0]
    K_pad, N_pad = w_p.shape
    out_dtype = x.dtype

    # Tiny shapes: the kernel itself is <1 us and pallas_call/pad overhead
    # dominates — fall back to a plain XLA dot unless forced.
    if use_pallas is None:
        use_pallas = (2 * B * N * K) >= (1 << 22)
    if not use_pallas:
        y = jnp.dot(x2.astype(cdt), w_p[:K, :N],
                    preferred_element_type=jnp.float32)
        y = (y + b_p[0, :N]).astype(out_dtype)
        return y.reshape(*lead, N)[..., None]

    # --- per-call activation prep (cheap: batch is the small dim) -----------
    M_pad = _round_up(B, 8)
    x_p = jnp.pad(x2, ((0, M_pad - B), (0, K_pad - K))).astype(cdt)

    # --- tile selection ------------------------------------------------------
    bx = bw = jnp.dtype(cdt).itemsize
    bo = jnp.dtype(out_dtype).itemsize
    use_scratch = out_dtype != jnp.float32

    vmem_limit, tile_budget = _vmem_budgets()

    tm = _largest_aligned_divisor(M_pad, 8, 512)
    tn = _largest_aligned_divisor(N_pad, 128, 1024)
    tk = K_pad  # prefer full-K: one accumulator pass, fewest K steps

    def working_set(tm_, tn_, tk_):
        ws = (2 * tm_ * tk_ * bx          # double-buffered activations
              + 2 * tk_ * tn_ * bw        # double-buffered weights
              + 2 * tm_ * tn_ * bo        # double-buffered output
              + 2 * tn_ * 4)              # bias blocks
        if use_scratch:
            ws += tm_ * tn_ * 4
        return ws

    while working_set(tm, tn, tk) > tile_budget and tk > 128:
        tk = _largest_aligned_divisor(K_pad, 128, max(128, tk // 2))
    while working_set(tm, tn, tk) > tile_budget and tn > 128:
        tn = _largest_aligned_divisor(N_pad, 128, max(128, tn // 2))
    while working_set(tm, tn, tk) > tile_budget and tm > 8:
        tm = _largest_aligned_divisor(M_pad, 8, max(8, tm // 2))

    # Give v7x's two TensorCores >=2 parallel tiles when the problem allows.
    if (M_pad // tm) * (N_pad // tn) == 1 and N_pad >= 256:
        tn = _largest_aligned_divisor(N_pad, 128, N_pad // 2)

    grid = (M_pad // tm, N_pad // tn, K_pad // tk)

    # --- specs ---------------------------------------------------------------
    x_spec = pl.BlockSpec((tm, tk), lambda i, j, k: (i, k))
    if K_pad // tk >= 4:
        # Weight-streaming regime: third buffer hides the DMA ramp.
        w_spec = pl.BlockSpec((tk, tn), lambda i, j, k: (k, j),
                              pipeline_mode=pl.Buffered(3))
    else:
        w_spec = pl.BlockSpec((tk, tn), lambda i, j, k: (k, j))
    b_spec = pl.BlockSpec((1, tn), lambda i, j, k: (0, j))
    o_spec = pl.BlockSpec((tm, tn), lambda i, j, k: (i, j))

    if use_scratch:
        kernel = _dense_kernel_scratch
        scratch = [pltpu.VMEM((tm, tn), jnp.float32)]
    else:
        kernel = _dense_kernel_accum_out
        scratch = []

    y = pl.pallas_call(
        kernel,
        out_shape=jax.ShapeDtypeStruct((M_pad, N_pad), out_dtype),
        grid_spec=pltpu.PrefetchScalarGridSpec(
            num_scalar_prefetch=0,
            grid=grid,
            in_specs=[x_spec, w_spec, b_spec],
            out_specs=o_spec,
            scratch_shapes=scratch,
        ),
        compiler_params=pltpu.CompilerParams(
            dimension_semantics=("parallel", "parallel", "arbitrary"),
            vmem_limit_bytes=int(vmem_limit),
        ),
        cost_estimate=pl.CostEstimate(
            flops=2 * M_pad * N_pad * K_pad,
            transcendentals=0,
            bytes_accessed=(M_pad * K_pad * bx + K_pad * N_pad * bw
                            + M_pad * N_pad * bo + N_pad * 4),
        ),
    )(x_p, w_p, b_p)

    y = y[:B, :N].reshape(*lead, N)
    return y[..., None]


def reference_forward(x, w, b):
    return (x @ w.T + b)[..., None]


# ----------------------------------------------------------------------------
# Demo / self-test
# ----------------------------------------------------------------------------
if __name__ == "__main__":
    key = jax.random.PRNGKey(0)
    k_x, k_w, k_b = jax.random.split(key, 3)

    batch = 2
    input_dim = 32
    output_dim = 64

    x = jax.random.normal(k_x, (batch, input_dim), dtype=jnp.float32)
    # Deterministic synthetic parameters (nn.Linear-style uniform init).
    bound = 1.0 / math.sqrt(input_dim)
    w = jax.random.uniform(k_w, (output_dim, input_dim),
                           minval=-bound, maxval=bound, dtype=jnp.float32)
    b = jax.random.uniform(k_b, (output_dim,),
                           minval=-bound, maxval=bound, dtype=jnp.float32)

    ref = reference_forward(x, w, b)

    # f32 operand path (exact-precision check). Params prepared ONCE.
    params_f32 = prepare_dense_params(w, b)
    out = jax.block_until_ready(dense_forward(x, params_f32, use_pallas=True))
    assert out.shape == (batch, output_dim, 1), out.shape
    assert jnp.allclose(out, ref, atol=1e-5, rtol=1e-5), "f32 path mismatch"

    # bf16 operand path: MXU-native feed, f32 accumulation (looser tolerance).
    params_bf16 = prepare_dense_params(w, b, compute_dtype=jnp.bfloat16)
    out_bf16 = jax.block_until_ready(dense_forward(x, params_bf16, use_pallas=True))
    assert out_bf16.shape == (batch, output_dim, 1), out_bf16.shape
    assert jnp.allclose(out_bf16, ref, atol=3e-2, rtol=3e-2), "bf16 path mismatch"

    print("KERNEL_OK")
</pallas_src>

<mosaic_0001>
module attributes {stable_mosaic.version = 11 : i64} {
  func.func @_dense_kernel_accum_out(%arg0: i32, %arg1: i32, %arg2: i32, %arg3: memref<8x128xf32, #tpu.memory_space<vmem>>, %arg4: memref<128x128xf32, #tpu.memory_space<vmem>>, %arg5: memref<1x128xf32, #tpu.memory_space<vmem>>, %arg6: memref<8x128xf32, #tpu.memory_space<vmem>>) attributes {dimension_semantics = [#tpu.dimension_semantics<parallel>, #tpu.dimension_semantics<parallel>, #tpu.dimension_semantics<arbitrary>], iteration_bounds = array<i64: 1, 1, 1>, scalar_prefetch = 0 : i64, scratch_operands = 0 : i64, tpu.core_type = #tpu.core_type<tc>, window_params = [{transform_indices = @transform_0, window_bounds = array<i64: 8, 128>}, {transform_indices = @transform_1, window_bounds = array<i64: 128, 128>}, {transform_indices = @transform_2, window_bounds = array<i64: 1, 128>}, {transform_indices = @transform_3, window_bounds = array<i64: 8, 128>}]} {
    %c0_i32 = arith.constant 0 : i32
    %0 = arith.cmpi eq, %arg2, %c0_i32 : i32
    %1 = arith.extui %0 : i1 to i32
    %c0_i32_0 = arith.constant 0 : i32
    %2 = arith.cmpi ne, %1, %c0_i32_0 : i32
    scf.if %2 {
      %cst_10 = arith.constant 0.000000e+00 : f32
      %12 = vector.broadcast %cst_10 : f32 to vector<8x128xf32>
      %c0_11 = arith.constant 0 : index
      %c0_12 = arith.constant 0 : index
      %13 = vector.load %arg6[%c0_11, %c0_12] : memref<8x128xf32, #tpu.memory_space<vmem>>, vector<8x128xf32>
      tpu.vector_store %arg6[%c0_11, %c0_12], %12 {strides = array<i32>} : memref<8x128xf32, #tpu.memory_space<vmem>>, vector<8x128xf32>,
    } else {
    }
    %c0 = arith.constant 0 : index
    %c0_1 = arith.constant 0 : index
    %3 = vector.load %arg6[%c0, %c0_1] : memref<8x128xf32, #tpu.memory_space<vmem>>, vector<8x128xf32>
    %c0_2 = arith.constant 0 : index
    %c0_3 = arith.constant 0 : index
    %4 = vector.load %arg3[%c0_2, %c0_3] : memref<8x128xf32, #tpu.memory_space<vmem>>, vector<8x128xf32>
    %c0_4 = arith.constant 0 : index
    %c0_5 = arith.constant 0 : index
    %5 = vector.load %arg4[%c0_4, %c0_5] : memref<128x128xf32, #tpu.memory_space<vmem>>, vector<128x128xf32>
    %cst = arith.constant dense<0.000000e+00> : vector<8x128xf32>
    %6 = tpu.matmul %4, %5, %cst {dimension_numbers = #tpu.dot_dimension_numbers<[1], [0], [0], [1], [0, 0, 1, 1], [], []>} : vector<8x128xf32>, vector<128x128xf32>, vector<8x128xf32> -> vector<8x128xf32>
    %7 = arith.addf %3, %6 : vector<8x128xf32>
    %c0_6 = arith.constant 0 : index
    %c0_7 = arith.constant 0 : index
    %8 = vector.load %arg6[%c0_6, %c0_7] : memref<8x128xf32, #tpu.memory_space<vmem>>, vector<8x128xf32>
    tpu.vector_store %arg6[%c0_6, %c0_7], %7 {strides = array<i32>} : memref<8x128xf32, #tpu.memory_space<vmem>>, vector<8x128xf32>,
    %c0_i32_8 = arith.constant 0 : i32
    %9 = arith.cmpi eq, %arg2, %c0_i32_8 : i32
    %10 = arith.extui %9 : i1 to i32
    %c0_i32_9 = arith.constant 0 : i32
    %11 = arith.cmpi ne, %10, %c0_i32_9 : i32
    scf.if %11 {
      %c0_10 = arith.constant 0 : index
      %c0_11 = arith.constant 0 : index
      %12 = vector.load %arg6[%c0_10, %c0_11] : memref<8x128xf32, #tpu.memory_space<vmem>>, vector<8x128xf32>
      %c0_12 = arith.constant 0 : index
      %c0_13 = arith.constant 0 : index
      %13 = vector.load %arg5[%c0_12, %c0_13] : memref<1x128xf32, #tpu.memory_space<vmem>>, vector<1x128xf32>
      %14 = vector.broadcast %13 : vector<1x128xf32> to vector<8x128xf32>
      %15 = arith.addf %12, %14 : vector<8x128xf32>
      %c0_14 = arith.constant 0 : index
      %c0_15 = arith.constant 0 : index
      %16 = vector.load %arg6[%c0_14, %c0_15] : memref<8x128xf32, #tpu.memory_space<vmem>>, vector<8x128xf32>
      tpu.vector_store %arg6[%c0_14, %c0_15], %15 {strides = array<i32>} : memref<8x128xf32, #tpu.memory_space<vmem>>, vector<8x128xf32>,
    } else {
    }
    return
  }
  func.func @transform_0(%arg0: i32, %arg1: i32, %arg2: i32) -> (i32, i32) {
    %c0_i32 = arith.constant 0 : i32
    return %arg0, %arg2 : i32, i32
  }
  func.func @transform_1(%arg0: i32, %arg1: i32, %arg2: i32) -> (i32, i32) {
    %c0_i32 = arith.constant 0 : i32
    return %arg2, %arg1 : i32, i32
  }
  func.func @transform_2(%arg0: i32, %arg1: i32, %arg2: i32) -> (i32, i32) {
    %c0_i32 = arith.constant 0 : i32
    %c0_i32_0 = arith.constant 0 : i32
    return %c0_i32, %arg1 : i32, i32
  }
  func.func @transform_3(%arg0: i32, %arg1: i32, %arg2: i32) -> (i32, i32) {
    %c0_i32 = arith.constant 0 : i32
    return %arg0, %arg1 : i32, i32
  }
}

</mosaic_0001>

<bundles_post_ra>
// kernel: tpu_custom_call.1
= control target key start
LH: loop header
LB: loop body
LE: loop exit
PB: predicated region body
PF: predicated region fallthrough
CT: control target
= control target key end

     0   :  { %8 = vsyncpa [#allocation3], 0  ;;  %s240_s0 = inlined_call_operand.hbm [shape: f32[8,128], index: 0, kind: input, shape index: {}]   ;;  %s241_s1 = inlined_call_operand.hbm [shape: f32[128,128], index: 1, kind: input, shape index: {}]   ;;  %s242_s2 = inlined_call_operand.vmem [shape: f32[1,128], index: 2, kind: input, shape index: {}]   ;;  %s243_s3 = inlined_call_operand.hbm [shape: f32[8,128], index: 3, kind: output, shape index: {}]  }
   0x1   :  { %9 = vsyncpa [#allocation6], 0 }
   0x2   :  { %10 = vsyncpa [#allocation4], 0  ;;  %s16_s14 = sshll.u32 %s240_s0, 4  ;;  %s203_s15 = smov [#allocation2]   ;;  %s17_s14 = int_to_ptr.hbm [resolvable:$true] %s16_s14 }
   0x3   :  { %s18_s16 = sshll.u32 %s203_s15, 4  ;;  %s26_s19 = sshll.u32 %s241_s1, 4  ;;  %s19_s16 = int_to_ptr.vmem [resolvable:$true] %s18_s16  ;;  %s27_s19 = int_to_ptr.hbm [resolvable:$true] %s26_s19 }
   0x4   :  { %21 = dma.hbm_to_vmem [thread:$0]  %s17_s14, 128, %s19_s16, [#allocation3]  }
   0x5   :  { %s204_s20 = smov [#allocation5]   ;;  %s205_s22 = smov 128  }
   0x6   :  { %s28_s21 = sshll.u32 %s204_s20, 4  ;;  %s206_s23 = smov 8   ;;  %s29_s21 = int_to_ptr.vmem [resolvable:$true] %s28_s21 }
   0x7   :  { %34 = dma.hbm_to_vmem [thread:$0]  %s27_s19, 2048, %s29_s21, [#allocation6], %s205_s22, %s205_s22, %s206_s23  }
   0x8   :  { %197 = dma.done.wait [#allocation3], 128  }
   0x9   :  { %198 = vsyncadd [#allocation3], 4294967168 }
   0xa   :  { %199 = dma.done.wait [#allocation6], 2048  }
   0xb   :  { %200 = vsyncadd [#allocation6], 4294965248  ;;  %v67_v0 = vld [vmem:[#allocation5 + $0x78] sm:$0xff]  ;;  %v66_v1 = vld [vmem:[#allocation5 + $0x70] sm:$0xff]  ;;  %s207_s24 = smov [#allocation7]   ;;  %s107_s28 = sshll.u32 %s243_s3, 4  ;;  %s108_s28 = int_to_ptr.hbm [resolvable:$true] %s107_s28 }
   0xc   :  { %68 = vmatpush.msra.mxu0 %v67_v0  ;;  %v65_v2 = vld [vmem:[#allocation5 + $0x68] sm:$0xff]  ;;  %v64_v3 = vld [vmem:[#allocation5 + $0x60] sm:$0xff]  ;;  %v63_v4 = vld [vmem:[#allocation5 + $0x58] sm:$0xff]  ;;  %s105_s25 = sshll.u32 %s207_s24, 4  ;;  %s106_s25 = int_to_ptr.vmem [resolvable:$true] %s105_s25 }
   0xd   :  { %v62_v5 = vld [vmem:[#allocation5 + $0x50] sm:$0xff]  ;;  %v61_v6 = vld [vmem:[#allocation5 + $0x48] sm:$0xff]  ;;  %v60_v7 = vld [vmem:[#allocation5 + $0x40] sm:$0xff] }
   0xe   :  { %69 = vmatpush.msra.mxu0 %v66_v1  ;;  %v59_v8 = vld [vmem:[#allocation5 + $0x38] sm:$0xff]  ;;  %v58_v9 = vld [vmem:[#allocation5 + $0x30] sm:$0xff]  ;;  %v57_v10 = vld [vmem:[#allocation5 + $0x28] sm:$0xff] }
   0xf   :  { %v56_v11 = vld [vmem:[#allocation5 + $0x20] sm:$0xff]  ;;  %v55_v12 = vld [vmem:[#allocation5 + $0x18] sm:$0xff]  ;;  %v54_v13 = vld [vmem:[#allocation5 + $0x10] sm:$0xff] }
  0x10   :  { %70 = vmatpush.msra.mxu0 %v65_v2  ;;  %v53_v14 = vld [vmem:[#allocation5 + $0x8] sm:$0xff]  ;;  %v52_v15 = vld [vmem:[#allocation5] sm:$0xff]  ;;  %v51_v16 = vld [vmem:[#allocation2] sm:$0xff] }
  0x11   :  { %v124_v17 = vld [vmem:[%s242_s2] ss:$0 sm:$0xff] }
  0x12   :  { %71 = vmatpush.msra.mxu0 %v64_v3 }
  0x14   :  { %72 = vmatpush.msra.mxu0 %v63_v4 }
  0x16   :  { %73 = vmatpush.msra.mxu0 %v62_v5 }
  0x18   :  { %74 = vmatpush.msra.mxu0 %v61_v6 }
  0x1a   :  { %75 = vmatpush.msra.mxu0 %v60_v7 }
  0x1c   :  { %76 = vmatpush.msra.mxu0 %v59_v8 }
  0x1e   :  { %77 = vmatpush.msra.mxu0 %v58_v9 }
  0x20   :  { %78 = vmatpush.msra.mxu0 %v57_v10 }
  0x22   :  { %79 = vmatpush.msra.mxu0 %v56_v11 }
  0x24   :  { %80 = vmatpush.msra.mxu0 %v55_v12 }
  0x26   :  { %81 = vmatpush.msra.mxu0 %v54_v13 }
  0x28   :  { %82 = vmatpush.msra.mxu0 %v53_v14 }
  0x2a   :  { %83 = vmatpush.msra.mxu0 %v52_v15 }
  0x2b   :  { %84 = vmatmul.f32.vlgmr.msra.gmra.mxu0 %v51_v16 }
  0xa8   :  { %v85_v18 = vpop.f32.mrf.mxu0 }
  0xa9   :  { %v98_v19 = vadd.f32 %v124_v17, %v85_v18 }
  0xab   :  { %99 = vst [vmem:[#allocation7] sm:$0xff] %v98_v19 }
  0xac   :  { %110 = dma.vmem_to_hbm [thread:$0]  %s106_s25, 128, %s108_s28, [#allocation4]  }
  0xad   :  { %201 = dma.done.wait [#allocation4], 128  }
  0xae   :  { %202 = vsyncadd [#allocation4], 4294967168 }
  0xaf   :  { %115 = vsyncpa [#allocation3], 1 }
  0xb0   :  { %116 = vsyncpa [#allocation6], 1 }
  0xb1   :  { %117 = vsyncpa [#allocation4], 1 }

</bundles_post_ra>
